<compile_context>
chip_gen: v7x
topology: tpu7x:2x2x1
jax: 0.10.0
libtpu: 0.0.40
codegen_flags: <defaults>
</compile_context>

<pallas_src>
import functools
import math

import jax
import jax.numpy as jnp
from jax import lax
from jax.experimental import pallas as pl
from jax.experimental.pallas import tpu as pltpu


# --------------------------- VMEM / tile sizing -----------------------------

@functools.lru_cache(maxsize=1)
def _vmem_budget():
    """~55% of physical VMEM (v5e/v6e: 128 MiB, v7x: 64 MiB), clamped."""
    cap = 64 * 1024 * 1024
    try:
        info = pltpu.get_tpu_info()
        cap = int(getattr(info, "vmem_capacity_bytes", cap))
    except Exception:
        pass
    return max(min(int(cap * 0.55), 100 * 1024 * 1024), 24 * 1024 * 1024)


def _pick_tile(dim, pref, align):
    """Largest tile <= pref that divides dim, preferring `align` multiples."""
    if dim <= pref:
        return dim
    cand = (pref // align) * align
    while cand >= align:
        if dim % cand == 0:
            return cand
        cand -= align
    cand = (pref // 8) * 8
    while cand >= 8:
        if dim % cand == 0:
            return cand
        cand -= 8
    return dim


def _choose_tiles(M, N, K, *, fuse_ln, out_bytes, budget):
    """Grow tiles toward the VMEM budget; shrink tm first on the LN path."""
    tm_pref, tn_pref, tk_pref = 512, 512, 512
    while True:
        tm = _pick_tile(M, tm_pref, 8)
        tk = _pick_tile(K, tk_pref, 128)
        tn = N if fuse_ln else _pick_tile(N, tn_pref, 128)
        est = (2 * tm * tk * 2            # x, bf16, double-buffered
               + 2 * tk * tn * 2          # w, bf16
               + 2 * tm * tn * out_bytes  # output
               + tm * tn * 4              # f32 accumulator
               + 8 * tn * 4)              # bias / gamma / beta rows
        if fuse_ln:
            est += 2 * tm * tn * 2        # bf16 residual
        if est <= budget:
            return tm, tn, tk
        if tm_pref > 128:
            tm_pref //= 2
        elif (not fuse_ln) and tn_pref > 256:
            tn_pref //= 2
        elif tk_pref > 256:
            tk_pref //= 2
        else:
            return tm, tn, tk


# ----------------------------- matmul kernels ------------------------------

def _mm_kernel(x_ref, w_ref, b_ref, o_ref, acc_ref, *, relu):
    @pl.when(pl.program_id(2) == 0)
    def _():
        acc_ref[...] = jnp.zeros_like(acc_ref)

    acc_ref[...] += jnp.dot(x_ref[...], w_ref[...],
                            preferred_element_type=jnp.float32)

    @pl.when(pl.program_id(2) == pl.num_programs(2) - 1)
    def _():
        y = acc_ref[...] + b_ref[...]
        if relu:
            y = jnp.maximum(y, 0.0)
        o_ref[...] = y.astype(o_ref.dtype)


def _mm_ln_kernel(x_ref, w_ref, b_ref, res_ref, g_ref, beta_ref,
                  o_ref, acc_ref, *, eps):
    @pl.when(pl.program_id(2) == 0)
    def _():
        acc_ref[...] = jnp.zeros_like(acc_ref)

    acc_ref[...] += jnp.dot(x_ref[...], w_ref[...],
                            preferred_element_type=jnp.float32)

    @pl.when(pl.program_id(2) == pl.num_programs(2) - 1)
    def _():
        y = acc_ref[...] + b_ref[...]
        z = res_ref[...].astype(jnp.float32) + y           # residual add (bf16 res)
        mu = jnp.mean(z, axis=-1, keepdims=True)
        var = jnp.mean((z - mu) ** 2, axis=-1, keepdims=True)
        zn = (z - mu) * lax.rsqrt(var + eps)               # EUP rsqrt
        o_ref[...] = (zn * g_ref[...] + beta_ref[...]).astype(o_ref.dtype)


def matmul(x, w, b, *, relu=False, residual=None, gamma=None, beta=None,
           out_dtype=jnp.bfloat16, eps=1e-5):
    """x: [M,K] bf16, w: [K,N] bf16 (pre-transposed), b: [1,N] f32 -> [M,N].

    If `residual`/`gamma`/`beta` are given, the epilogue computes
    LayerNorm(residual + (x @ w + b)) fused in the same kernel.
    """
    M, K = x.shape
    _, N = w.shape
    fuse_ln = residual is not None
    budget = _vmem_budget()
    tm, tn, tk = _choose_tiles(M, N, K, fuse_ln=fuse_ln,
                               out_bytes=jnp.dtype(out_dtype).itemsize,
                               budget=budget)
    grid = (M // tm, N // tn, K // tk)

    in_specs = [
        pl.BlockSpec((tm, tk), lambda i, j, k: (i, k)),
        pl.BlockSpec((tk, tn), lambda i, j, k: (k, j)),
        pl.BlockSpec((1, tn), lambda i, j, k: (0, j)),
    ]
    args = [x, w, b]
    if fuse_ln:
        kernel = functools.partial(_mm_ln_kernel, eps=eps)
        in_specs += [
            pl.BlockSpec((tm, tn), lambda i, j, k: (i, j)),
            pl.BlockSpec((1, tn), lambda i, j, k: (0, j)),
            pl.BlockSpec((1, tn), lambda i, j, k: (0, j)),
        ]
        args += [residual, gamma, beta]
    else:
        kernel = functools.partial(_mm_kernel, relu=relu)

    return pl.pallas_call(
        kernel,
        out_shape=jax.ShapeDtypeStruct((M, N), out_dtype),
        grid=grid,
        in_specs=in_specs,
        out_specs=pl.BlockSpec((tm, tn), lambda i, j, k: (i, j)),
        scratch_shapes=[pltpu.VMEM((tm, tn), jnp.float32)],
        compiler_params=pltpu.CompilerParams(
            dimension_semantics=("parallel", "parallel", "arbitrary"),
            vmem_limit_bytes=budget),
    )(*args)


# ----------------------------- attention kernel -----------------------------

def _attn_body(bias_ref, q_ref, kv_ref, o_ref, m_sc, l_sc, acc_sc, *,
               num_heads, dk, causal, q_off):
    """Online-softmax attention over one Sk tile, all heads of one batch.

    q_ref : (Sq, *) bf16, Q for head h at columns q_off + [h*dk, (h+1)*dk)
            (scale 1/sqrt(dk) pre-folded into the projection weights).
    kv_ref: (Tk, *) bf16, K at columns [h*dk,(h+1)*dk), V at E + same.
    o_ref : (Sq, E) bf16, head-merged lane-dense output (written on last tile).
    """
    E = num_heads * dk
    kv_i = pl.program_id(1)

    @pl.when(kv_i == 0)
    def _():
        m_sc[...] = jnp.full_like(m_sc, -1e30)
        l_sc[...] = jnp.zeros_like(l_sc)
        acc_sc[...] = jnp.zeros_like(acc_sc)

    Sq = acc_sc.shape[0]
    Tk = kv_ref.shape[0]

    bias = bias_ref[...] if bias_ref is not None else None      # (1, Tk) f32

    if causal:
        row = lax.broadcasted_iota(jnp.int32, (Sq, Tk), 0)
        col = lax.broadcasted_iota(jnp.int32, (Sq, Tk), 1) + kv_i * Tk
        cmask = col > row

    for h in range(num_heads):
        q = q_ref[:, q_off + h * dk: q_off + (h + 1) * dk]      # (Sq, dk) bf16
        k = kv_ref[:, h * dk:(h + 1) * dk]                      # (Tk, dk) bf16
        v = kv_ref[:, E + h * dk: E + (h + 1) * dk]             # (Tk, dk) bf16

        s = lax.dot_general(q, k, (((1,), (1,)), ((), ())),
                            preferred_element_type=jnp.float32)  # (Sq, Tk)
        if bias is not None:
            s = s + bias
        if causal:
            s = jnp.where(cmask, -1e30, s)     # finite sentinel: no NaNs

        m_prev = m_sc[h]                                          # (Sq, 1)
        m_new = jnp.maximum(m_prev, jnp.max(s, axis=-1, keepdims=True))
        alpha = jnp.exp(m_prev - m_new)
        p = jnp.exp(s - m_new)
        l_sc[h] = alpha * l_sc[h] + jnp.sum(p, axis=-1, keepdims=True)
        osl = slice(h * dk, (h + 1) * dk)
        acc_sc[:, osl] = alpha * acc_sc[:, osl] + jnp.dot(
            p.astype(v.dtype), v, preferred_element_type=jnp.float32)
        m_sc[h] = m_new

    @pl.when(kv_i == pl.num_programs(1) - 1)
    def _():
        for h in range(num_heads):
            osl = slice(h * dk, (h + 1) * dk)
            inv = pl.reciprocal(l_sc[h], approx=True)             # EUP slot
            o_ref[:, osl] = (acc_sc[:, osl] * inv).astype(o_ref.dtype)


def _attn_kernel(q_ref, kv_ref, o_ref, m_sc, l_sc, acc_sc, **kw):
    _attn_body(None, q_ref, kv_ref, o_ref, m_sc, l_sc, acc_sc, **kw)


def _attn_kernel_bias(bias_ref, q_ref, kv_ref, o_ref, m_sc, l_sc, acc_sc, **kw):
    _attn_body(bias_ref, q_ref, kv_ref, o_ref, m_sc, l_sc, acc_sc, **kw)


def attention(qsrc, kvsrc, *, num_heads, embed_dim, causal, bias=None,
              q_col_start=0, sk_tile_pref=512):
    """Multi-head attention, heads read directly from fused projections.

    qsrc : [B, Sq, Cq] bf16; Q lives at columns [q_col_start, q_col_start+E).
    kvsrc: [B, Sk, Ckv] bf16; K at columns [0, E), V at [E, 2E).
           (self-attention passes the same [B,S,3E] array, layout [K|V|Q]).
    bias : optional [B, Sk] f32 additive mask (-1e30 at padded positions).
    Returns [B, Sq, E] bf16, heads merged (lane-dense output slab).
    """
    B, Sq, Cq = qsrc.shape
    _, Sk, Ckv = kvsrc.shape
    E = embed_dim
    dk = E // num_heads

    tk = _pick_tile(Sk, sk_tile_pref, 128)
    n_kv = Sk // tk

    # K|V block: slice to leading 2E columns when lane-aligned, else full width.
    kv_cols = 2 * E if (Ckv == 2 * E or (2 * E) % 128 == 0) else Ckv
    # Q block: slice to E columns at q_col_start when aligned, else full width.
    if Cq == E:
        q_cols, q_blk, q_off = E, 0, 0
    elif E % 128 == 0 and q_col_start % E == 0:
        q_cols, q_blk, q_off = E, q_col_start // E, 0
    else:
        q_cols, q_blk, q_off = Cq, 0, q_col_start

    has_bias = bias is not None
    kern = _attn_kernel_bias if has_bias else _attn_kernel
    kernel = functools.partial(kern, num_heads=num_heads, dk=dk,
                               causal=causal, q_off=q_off)

    in_specs = []
    args = []
    if has_bias:
        in_specs.append(pl.BlockSpec((1, tk), lambda b, kvi: (b, kvi)))
        args.append(bias)
    in_specs += [
        pl.BlockSpec((None, Sq, q_cols), lambda b, kvi: (b, 0, q_blk)),
        pl.BlockSpec((None, tk, kv_cols), lambda b, kvi: (b, kvi, 0)),
    ]
    args += [qsrc, kvsrc]

    return pl.pallas_call(
        kernel,
        out_shape=jax.ShapeDtypeStruct((B, Sq, E), jnp.bfloat16),
        grid=(B, n_kv),
        in_specs=in_specs,
        out_specs=pl.BlockSpec((None, Sq, E), lambda b, kvi: (b, 0, 0)),
        scratch_shapes=[
            pltpu.VMEM((num_heads, Sq, 1), jnp.float32),   # running max
            pltpu.VMEM((num_heads, Sq, 1), jnp.float32),   # running sum
            pltpu.VMEM((Sq, E), jnp.float32),              # output accumulator
        ],
        compiler_params=pltpu.CompilerParams(
            dimension_semantics=("parallel", "arbitrary"),
            vmem_limit_bytes=_vmem_budget()),
    )(*args)


# --------------------------- model (Pallas path) ---------------------------

def decoder_layer(prep, x_bf, enc_flat, enc_bias, num_heads):
    B, S, E = x_bf.shape
    Se = enc_flat.shape[0] // B
    x_flat = x_bf.reshape(B * S, E)

    # --- masked self attention (fused [K|V|Q] projection, bf16 out) ---
    kvq = matmul(x_flat, prep["w_kvq"], prep["b_kvq"])            # [B*S, 3E] bf16
    kvq3 = kvq.reshape(B, S, 3 * E)
    a = attention(kvq3, kvq3, num_heads=num_heads, embed_dim=E,
                  causal=True, q_col_start=2 * E)                 # [B,S,E] bf16
    # output projection + residual + LayerNorm, fused
    h = matmul(a.reshape(B * S, E), prep["w_so"], prep["b_so"],
               residual=x_flat, gamma=prep["ln1_g"], beta=prep["ln1_b"])

    # --- cross attention (Q from h, fused [K|V] projection of encoder out) ---
    qx = matmul(h, prep["w_cq"], prep["b_cq"])                    # [B*S, E]  bf16
    kv = matmul(enc_flat, prep["w_ckv"], prep["b_ckv"])           # [B*Se,2E] bf16
    c = attention(qx.reshape(B, S, E), kv.reshape(B, Se, 2 * E),
                  num_heads=num_heads, embed_dim=E, causal=False,
                  bias=enc_bias, q_col_start=0)
    h2 = matmul(c.reshape(B * S, E), prep["w_co"], prep["b_co"],
                residual=h, gamma=prep["ln2_g"], beta=prep["ln2_b"])

    # --- pointwise FFN (ReLU fused into FF1, add+LN fused into FF2) ---
    f1 = matmul(h2, prep["w_ff1"], prep["b_ff1"], relu=True)      # bf16
    out = matmul(f1, prep["w_ff2"], prep["b_ff2"],
                 residual=h2, gamma=prep["ln3_g"], beta=prep["ln3_b"])
    return out.reshape(B, S, E)


def decoder_stack(prep_params, x, enc_out, enc_padding_mask, num_heads):
    B, S, E = x.shape
    Se = enc_out.shape[1]
    enc_bias = None
    if enc_padding_mask is not None:
        enc_bias = jnp.where(enc_padding_mask == 0, -1e30, 0.0).astype(jnp.float32)
    xb = x.astype(jnp.bfloat16)
    enc_flat = enc_out.astype(jnp.bfloat16).reshape(B * Se, E)
    for prep in prep_params:
        xb = decoder_layer(prep, xb, enc_flat, enc_bias, num_heads)
    return xb.astype(jnp.float32)


# ------------------------------ parameter init ------------------------------

def _init_linear(key, out_f, in_f):
    k1, k2 = jax.random.split(key)
    bound = 1.0 / math.sqrt(in_f)
    w = jax.random.uniform(k1, (out_f, in_f), jnp.float32, -bound, bound)
    b = jax.random.uniform(k2, (out_f,), jnp.float32, -bound, bound)
    return w, b


def init_decoder_stack(key, embed_dim, num_heads, num_layers, d_ff):
    params = []
    for _ in range(num_layers):
        keys = jax.random.split(key, 5)
        key = keys[0]

        def mha_params(k):
            ks = jax.random.split(k, 4)
            wq, bq = _init_linear(ks[0], embed_dim, embed_dim)
            wk, bk = _init_linear(ks[1], embed_dim, embed_dim)
            wv, bv = _init_linear(ks[2], embed_dim, embed_dim)
            wo, bo = _init_linear(ks[3], embed_dim, embed_dim)
            return {"wq": wq, "bq": bq, "wk": wk, "bk": bk,
                    "wv": wv, "bv": bv, "wo": wo, "bo": bo}

        w1, b1 = _init_linear(keys[3], d_ff, embed_dim)
        w2, b2 = _init_linear(keys[4], embed_dim, d_ff)
        p = {
            "self_att": mha_params(keys[1]),
            "cross_att": mha_params(keys[2]),
            "w_ff1": w1, "b_ff1": b1, "w_ff2": w2, "b_ff2": b2,
            "ln1_g": jnp.ones((embed_dim,), jnp.float32),
            "ln1_b": jnp.zeros((embed_dim,), jnp.float32),
            "ln2_g": jnp.ones((embed_dim,), jnp.float32),
            "ln2_b": jnp.zeros((embed_dim,), jnp.float32),
            "ln3_g": jnp.ones((embed_dim,), jnp.float32),
            "ln3_b": jnp.zeros((embed_dim,), jnp.float32),
        }
        params.append(p)
    return params


def prepare_params(params, num_heads):
    """PyTorch-layout f32 params -> fused / transposed / bf16 kernel params.

    The 1/sqrt(dk) attention scale is folded into the Q projection weights
    and bias (free at runtime). Self-attention projections are fused in
    [K | V | Q] column order so the K|V block starts at column 0.
    """
    def t(w, scale=None):
        wt = jnp.asarray(w, jnp.float32).T
        if scale is not None:
            wt = wt * scale
        return wt.astype(jnp.bfloat16)

    def b2(b, scale=None):
        bb = jnp.asarray(b, jnp.float32).reshape(1, -1)
        if scale is not None:
            bb = bb * scale
        return bb

    prepped = []
    for p in params:
        sa, ca = p["self_att"], p["cross_att"]
        E = sa["wq"].shape[0]
        scale = 1.0 / math.sqrt(E // num_heads)
        prepped.append({
            "w_kvq": jnp.concatenate(
                [t(sa["wk"]), t(sa["wv"]), t(sa["wq"], scale)], axis=1),
            "b_kvq": jnp.concatenate(
                [b2(sa["bk"]), b2(sa["bv"]), b2(sa["bq"], scale)], axis=1),
            "w_so": t(sa["wo"]), "b_so": b2(sa["bo"]),
            "w_cq": t(ca["wq"], scale), "b_cq": b2(ca["bq"], scale),
            "w_ckv": jnp.concatenate([t(ca["wk"]), t(ca["wv"])], axis=1),
            "b_ckv": jnp.concatenate([b2(ca["bk"]), b2(ca["bv"])], axis=1),
            "w_co": t(ca["wo"]), "b_co": b2(ca["bo"]),
            "w_ff1": t(p["w_ff1"]), "b_ff1": b2(p["b_ff1"]),
            "w_ff2": t(p["w_ff2"]), "b_ff2": b2(p["b_ff2"]),
            "ln1_g": b2(p["ln1_g"]), "ln1_b": b2(p["ln1_b"]),
            "ln2_g": b2(p["ln2_g"]), "ln2_b": b2(p["ln2_b"]),
            "ln3_g": b2(p["ln3_g"]), "ln3_b": b2(p["ln3_b"]),
        })
    return prepped


# --------------------------- pure-JAX reference -----------------------------

def _ref_mha(p, x_q, x_kv, num_heads, causal, padding_mask=None):
    B, Sq, E = x_q.shape
    dk = E // num_heads

    def proj(x, w, b):
        return (x @ w.T + b).reshape(B, -1, num_heads, dk).transpose(0, 2, 1, 3)

    q = proj(x_q, p["wq"], p["bq"])
    k = proj(x_kv, p["wk"], p["bk"])
    v = proj(x_kv, p["wv"], p["bv"])
    s = q @ jnp.swapaxes(k, -1, -2) / jnp.sqrt(jnp.float32(dk))
    if causal:
        row = lax.broadcasted_iota(jnp.int32, (Sq, Sq), 0)
        col = lax.broadcasted_iota(jnp.int32, (Sq, Sq), 1)
        s = s + jnp.where(col > row, -jnp.inf, 0.0)
    if padding_mask is not None:
        pm = jnp.where(padding_mask == 0, -jnp.inf, 0.0)[:, None, None, :]
        s = s + pm
    a = jax.nn.softmax(s, axis=-1)
    o = (a @ v).transpose(0, 2, 1, 3).reshape(B, Sq, E)
    return o @ p["wo"].T + p["bo"]


def _ref_ln(z, g, b):
    mu = jnp.mean(z, axis=-1, keepdims=True)
    var = jnp.mean((z - mu) ** 2, axis=-1, keepdims=True)
    return (z - mu) / jnp.sqrt(var + 1e-5) * g + b


def ref_decoder_stack(params, x, enc_out, enc_padding_mask, num_heads):
    for p in params:
        a = _ref_mha(p["self_att"], x, x, num_heads, True)
        h = _ref_ln(x + a, p["ln1_g"], p["ln1_b"])
        c = _ref_mha(p["cross_att"], h, enc_out, num_heads, False,
                     padding_mask=enc_padding_mask)
        h2 = _ref_ln(h + c, p["ln2_g"], p["ln2_b"])
        f = jnp.maximum(h2 @ p["w_ff1"].T + p["b_ff1"], 0.0) @ p["w_ff2"].T + p["b_ff2"]
        x = _ref_ln(h2 + f, p["ln3_g"], p["ln3_b"])
    return x


# ----------------------------------- main -----------------------------------

if __name__ == "__main__":
    embed_dim, num_heads, num_layers, d_ff = 128, 4, 2, 256
    B, dec_len, enc_len = 2, 8, 16

    key = jax.random.PRNGKey(0)
    k_p, k_x, k_e = jax.random.split(key, 3)

    params = init_decoder_stack(k_p, embed_dim, num_heads, num_layers, d_ff)
    prep = prepare_params(params, num_heads)

    x = jax.random.normal(k_x, (B, dec_len, embed_dim), jnp.float32)
    enc_out = jax.random.normal(k_e, (B, enc_len, embed_dim), jnp.float32)
    # encoder padding mask: 1 = keep, 0 = masked (last 4 positions of batch 1)
    enc_padding_mask = jnp.ones((B, enc_len), jnp.int32).at[1, -4:].set(0)

    out = jax.block_until_ready(
        decoder_stack(prep, x, enc_out, enc_padding_mask, num_heads))
    ref = jax.block_until_ready(
        ref_decoder_stack(params, x, enc_out, enc_padding_mask, num_heads))

    assert out.shape == (B, dec_len, embed_dim)
    max_diff = float(jnp.max(jnp.abs(out - ref)))
    # bf16 matmul inputs / activations (f32 accumulation) vs pure-f32 reference
    assert bool(jnp.allclose(out, ref, atol=5e-2, rtol=5e-2)), \
        f"max abs diff {max_diff}"

    print("KERNEL_OK")
</pallas_src>

<mosaic_0001>
module attributes {stable_mosaic.version = 11 : i64} {
  func.func @_mm_kernel(%arg0: i32, %arg1: i32, %arg2: i32, %arg3: memref<16x128xbf16, #tpu.memory_space<vmem>>, %arg4: memref<128x384xbf16, #tpu.memory_space<vmem>>, %arg5: memref<1x384xf32, #tpu.memory_space<vmem>>, %arg6: memref<16x384xbf16, #tpu.memory_space<vmem>>, %arg7: memref<16x384xf32, #tpu.memory_space<vmem>>) attributes {dimension_semantics = [#tpu.dimension_semantics<parallel>, #tpu.dimension_semantics<parallel>, #tpu.dimension_semantics<arbitrary>], iteration_bounds = array<i64: 1, 1, 1>, scalar_prefetch = 0 : i64, scratch_operands = 1 : i64, tpu.core_type = #tpu.core_type<tc>, window_params = [{transform_indices = @transform_0, window_bounds = array<i64: 16, 128>}, {transform_indices = @transform_1, window_bounds = array<i64: 128, 384>}, {transform_indices = @transform_2, window_bounds = array<i64: 1, 384>}, {transform_indices = @transform_3, window_bounds = array<i64: 16, 384>}]} {
    %c0_i32 = arith.constant 0 : i32
    %0 = arith.cmpi eq, %arg2, %c0_i32 : i32
    %1 = arith.extui %0 : i1 to i32
    %c0_i32_0 = arith.constant 0 : i32
    %2 = arith.cmpi ne, %1, %c0_i32_0 : i32
    scf.if %2 {
      %cst_10 = arith.constant 0.000000e+00 : f32
      %12 = vector.broadcast %cst_10 : f32 to vector<16x384xf32>
      %c0_11 = arith.constant 0 : index
      %c0_12 = arith.constant 0 : index
      %13 = vector.load %arg7[%c0_11, %c0_12] : memref<16x384xf32, #tpu.memory_space<vmem>>, vector<16x384xf32>
      tpu.vector_store %arg7[%c0_11, %c0_12], %12 {strides = array<i32>} : memref<16x384xf32, #tpu.memory_space<vmem>>, vector<16x384xf32>,
    } else {
    }
    %c0 = arith.constant 0 : index
    %c0_1 = arith.constant 0 : index
    %3 = vector.load %arg7[%c0, %c0_1] : memref<16x384xf32, #tpu.memory_space<vmem>>, vector<16x384xf32>
    %c0_2 = arith.constant 0 : index
    %c0_3 = arith.constant 0 : index
    %4 = vector.load %arg3[%c0_2, %c0_3] : memref<16x128xbf16, #tpu.memory_space<vmem>>, vector<16x128xbf16>
    %c0_4 = arith.constant 0 : index
    %c0_5 = arith.constant 0 : index
    %5 = vector.load %arg4[%c0_4, %c0_5] : memref<128x384xbf16, #tpu.memory_space<vmem>>, vector<128x384xbf16>
    %cst = arith.constant dense<0.000000e+00> : vector<16x384xf32>
    %6 = tpu.matmul %4, %5, %cst {dimension_numbers = #tpu.dot_dimension_numbers<[1], [0], [0], [1], [0, 0, 1, 1], [], []>} : vector<16x128xbf16>, vector<128x384xbf16>, vector<16x384xf32> -> vector<16x384xf32>
    %7 = arith.addf %3, %6 : vector<16x384xf32>
    %c0_6 = arith.constant 0 : index
    %c0_7 = arith.constant 0 : index
    %8 = vector.load %arg7[%c0_6, %c0_7] : memref<16x384xf32, #tpu.memory_space<vmem>>, vector<16x384xf32>
    tpu.vector_store %arg7[%c0_6, %c0_7], %7 {strides = array<i32>} : memref<16x384xf32, #tpu.memory_space<vmem>>, vector<16x384xf32>,
    %c0_i32_8 = arith.constant 0 : i32
    %9 = arith.cmpi eq, %arg2, %c0_i32_8 : i32
    %10 = arith.extui %9 : i1 to i32
    %c0_i32_9 = arith.constant 0 : i32
    %11 = arith.cmpi ne, %10, %c0_i32_9 : i32
    scf.if %11 {
      %c0_10 = arith.constant 0 : index
      %c0_11 = arith.constant 0 : index
      %12 = vector.load %arg7[%c0_10, %c0_11] : memref<16x384xf32, #tpu.memory_space<vmem>>, vector<16x384xf32>
      %c0_12 = arith.constant 0 : index
      %c0_13 = arith.constant 0 : index
      %13 = vector.load %arg5[%c0_12, %c0_13] : memref<1x384xf32, #tpu.memory_space<vmem>>, vector<1x384xf32>
      %14 = vector.broadcast %13 : vector<1x384xf32> to vector<16x384xf32>
      %15 = arith.addf %12, %14 : vector<16x384xf32>
      %16 = arith.truncf %15 : vector<16x384xf32> to vector<16x384xbf16>
      %c0_14 = arith.constant 0 : index
      %c0_15 = arith.constant 0 : index
      %17 = vector.load %arg6[%c0_14, %c0_15] : memref<16x384xbf16, #tpu.memory_space<vmem>>, vector<16x384xbf16>
      tpu.vector_store %arg6[%c0_14, %c0_15], %16 {strides = array<i32>} : memref<16x384xbf16, #tpu.memory_space<vmem>>, vector<16x384xbf16>,
    } else {
    }
    return
  }
  func.func @transform_0(%arg0: i32, %arg1: i32, %arg2: i32) -> (i32, i32) {
    %c0_i32 = arith.constant 0 : i32
    return %arg0, %arg2 : i32, i32
  }
  func.func @transform_1(%arg0: i32, %arg1: i32, %arg2: i32) -> (i32, i32) {
    %c0_i32 = arith.constant 0 : i32
    return %arg2, %arg1 : i32, i32
  }
  func.func @transform_2(%arg0: i32, %arg1: i32, %arg2: i32) -> (i32, i32) {
    %c0_i32 = arith.constant 0 : i32
    %c0_i32_0 = arith.constant 0 : i32
    return %c0_i32, %arg1 : i32, i32
  }
  func.func @transform_3(%arg0: i32, %arg1: i32, %arg2: i32) -> (i32, i32) {
    %c0_i32 = arith.constant 0 : i32
    return %arg0, %arg1 : i32, i32
  }
}

</mosaic_0001>

<bundles_post_ra>
// kernel: tpu_custom_call.1
= control target key start
LH: loop header
LB: loop body
LE: loop exit
PB: predicated region body
PF: predicated region fallthrough
CT: control target
= control target key end

     0   :  { %8 = vsyncpa [#allocation4], 0  ;;  %s650_s0 = inlined_call_operand.hbm [shape: bf16[16,128], index: 0, kind: input, shape index: {}]   ;;  %s651_s1 = inlined_call_operand.hbm [shape: bf16[128,384], index: 1, kind: input, shape index: {}]   ;;  %s652_s2 = inlined_call_operand.vmem [shape: f32[1,384], index: 2, kind: input, shape index: {}]   ;;  %s653_s3 = inlined_call_operand.hbm [shape: bf16[16,384], index: 3, kind: output, shape index: {}]  }
   0x1   :  { %9 = vsyncpa [#allocation7], 0 }
   0x2   :  { %10 = vsyncpa [#allocation5], 0  ;;  %s575_s12 = smov [#allocation3]   ;;  %s503_s16 = scalar_lea.hbm %s650_s0, 128 }
   0x3   :  { %s16_s13 = sshll.u32 %s575_s12, 4  ;;  %p504_p0 = scmp.ne.s32.totalorder %s650_s0, %s503_s16  ;;  %s17_s13 = int_to_ptr.vmem [resolvable:$true] %s16_s13 }
   0x4   :  { %p507_p1 = scmp.lt.u32.totalorder %s503_s16, %s650_s0 }
   0x6   :  { %p509_p2 = pnand %p507_p1, %p504_p0 }
   0x8   :  { %512 = shalt.err (!%p509_p2)
}
   0x9   :  { %s513_s21 = scalar_lea.vmem %s17_s13, 128  ;;  %p518_p4 = scmp.lt.s32.totalorder %s17_s13, %s17_s13 }
   0xa   :  { %p514_p3 = scmp.ne.s32.totalorder %s17_s13, %s513_s21  ;;  %p519_p5 = scmp.lt.s32.totalorder %s513_s21, %s513_s21 }
   0xc   :  { %p520_p6 = por %p519_p5, %p518_p4 }
   0xe   :  { %p521_p7 = pnand %p520_p6, %p514_p3 }
  0x10   :  { %524 = shalt.err (!%p521_p7)
}
  0x11   :  { %s576_s22 = smov 64   ;;  %s577_s23 = smov 4  }
  0x12   :  { %22 = dma.hbm_to_vmem [thread:$0]  %s650_s0, 128, %s17_s13, [#allocation4], %s576_s22, %s576_s22, %s577_s23  }
  0x13   :  { %s578_s26 = smov [#allocation6]   ;;  %s525_s30 = scalar_lea.hbm %s651_s1, 3072 }
  0x14   :  { %s28_s27 = sshll.u32 %s578_s26, 4  ;;  %p526_p8 = scmp.ne.s32.totalorder %s651_s1, %s525_s30  ;;  %s29_s27 = int_to_ptr.vmem [resolvable:$true] %s28_s27 }
  0x15   :  { %p529_p9 = scmp.lt.u32.totalorder %s525_s30, %s651_s1 }
  0x17   :  { %p531_p10 = pnand %p529_p9, %p526_p8 }
  0x19   :  { %534 = shalt.err (!%p531_p10)
}
  0x1a   :  { %s535_s8 = scalar_lea.vmem %s29_s27, 3072  ;;  %p540_p12 = scmp.lt.s32.totalorder %s29_s27, %s29_s27 }
  0x1b   :  { %p536_p11 = scmp.ne.s32.totalorder %s29_s27, %s535_s8  ;;  %p541_p13 = scmp.lt.s32.totalorder %s535_s8, %s535_s8 }
  0x1d   :  { %p542_p0 = por %p541_p13, %p540_p12 }
  0x1f   :  { %p543_p1 = pnand %p542_p0, %p536_p11 }
  0x21   :  { %546 = shalt.err (!%p543_p1)
}
  0x22   :  { %s579_s0 = smov 192   ;;  %s580_s9 = smov 12  }
  0x23   :  { %34 = dma.hbm_to_vmem [thread:$0]  %s651_s1, 3072, %s29_s27, [#allocation7], %s579_s0, %s579_s0, %s580_s9  }
  0x24   :  { %569 = dma.done.wait [#allocation4], 128  }
  0x25   :  { %570 = vsyncadd [#allocation4], 4294967168 }
  0x26   :  { %571 = dma.done.wait [#allocation7], 3072  }
  0x27   :  { %572 = vsyncadd [#allocation7], 4294964224  ;;  %v581_v0 = vmov 0.0   ;;  %vm582_vm0 = vmmov 0   ;;  %v583_v1 = vmov 0   ;;  %v502_v26 = vld [vmem:[#allocation3] sm:$0xff]   ;;  %v335_v27 = vlaneseq }
  0x28   :  { %440 = vmatprep.subr.bf16.mxu1 %v581_v0  ;;  %456 = vmatprep.mubr.msk.bf16.mxu1 %vm582_vm0, %v581_v0  ;;  %v470_v2 = vld [vmem:[#allocation6 + $0x4] ss:$12 sps:$4 sm:$0xff]   ;;  %v472_v3 = vld [vmem:[#allocation6 + $0x8] ss:$12 sps:$4 sm:$0xff]   ;;  %v473_v4 = vld [vmem:[#allocation6] ss:$12 sps:$4 sm:$0xff]  }
  0x29   :  { %260 = vmatprep.mubr.bf16.mxu0 %v583_v1  ;;  %228 = vmatprep.subr.bf16.mxu0 %v470_v2  ;;  %v474_v5 = vld [vmem:[#allocation6 + $0x1c] ss:$12 sps:$4 sm:$0xff]   ;;  %v476_v6 = vld [vmem:[#allocation6 + $0x20] ss:$12 sps:$4 sm:$0xff]   ;;  %v477_v7 = vld [vmem:[#allocation6 + $0x18] ss:$12 sps:$4 sm:$0xff]  }
  0x2a   :  { %441 = vmatpush3.bf16.msra.mxu1 %v472_v3  ;;  %229 = vmatpush1.bf16.msra.mxu0 %v473_v4  ;;  %v478_v8 = vld [vmem:[#allocation6 + $0x34] ss:$12 sps:$4 sm:$0xff]   ;;  %v480_v9 = vld [vmem:[#allocation6 + $0x38] ss:$12 sps:$4 sm:$0xff]   ;;  %v481_v10 = vld [vmem:[#allocation6 + $0x30] ss:$12 sps:$4 sm:$0xff]  }
  0x2b   :  { %442 = vmatprep.subr.bf16.mxu1 %v581_v0  ;;  %230 = vmatprep.subr.bf16.mxu0 %v474_v5  ;;  %v482_v11 = vld [vmem:[#allocation6 + $0x4c] ss:$12 sps:$4 sm:$0xff]   ;;  %v484_v12 = vld [vmem:[#allocation6 + $0x50] ss:$12 sps:$4 sm:$0xff]   ;;  %v485_v13 = vld [vmem:[#allocation6 + $0x48] ss:$12 sps:$4 sm:$0xff]  }
  0x2c   :  { %v486_v14 = vld [vmem:[#allocation6 + $0x64] ss:$12 sps:$4 sm:$0xff]   ;;  %v488_v15 = vld [vmem:[#allocation6 + $0x68] ss:$12 sps:$4 sm:$0xff]   ;;  %v489_v16 = vld [vmem:[#allocation6 + $0x60] ss:$12 sps:$4 sm:$0xff]  }
  0x2d   :  { %v490_v17 = vld [vmem:[#allocation6 + $0x7c] ss:$12 sps:$4 sm:$0xff]   ;;  %v492_v18 = vld [vmem:[#allocation6 + $0x80] ss:$12 sps:$4 sm:$0xff]   ;;  %v493_v19 = vld [vmem:[#allocation6 + $0x78] ss:$12 sps:$4 sm:$0xff]  }
  0x2e   :  { %443 = vmatpush3.bf16.msra.mxu1 %v476_v6  ;;  %231 = vmatpush1.bf16.msra.mxu0 %v477_v7  ;;  %v494_v20 = vld [vmem:[#allocation6 + $0x94] ss:$12 sps:$4 sm:$0xff]   ;;  %v496_v21 = vld [vmem:[#allocation6 + $0x98] ss:$12 sps:$4 sm:$0xff]   ;;  %v497_v22 = vld [vmem:[#allocation6 + $0x90] ss:$12 sps:$4 sm:$0xff]  }
  0x2f   :  { %444 = vmatprep.subr.bf16.mxu1 %v581_v0  ;;  %232 = vmatprep.subr.bf16.mxu0 %v478_v8  ;;  %v498_v23 = vld [vmem:[#allocation6 + $0xac] ss:$12 sps:$4 sm:$0xff]   ;;  %v500_v24 = vld [vmem:[#allocation6 + $0xb0] ss:$12 sps:$4 sm:$0xff]   ;;  %v501_v25 = vld [vmem:[#allocation6 + $0xa8] ss:$12 sps:$4 sm:$0xff]  }
  0x30   :  { %v336_v28 = vshrl.u32 %v335_v27, 7  ;;  %v333_v30 = vld [vmem:[%s652_s2] sm:$0x7]  ;;  %s584_s2 = smov [#allocation8]  }
  0x31   :  { %s385_s13 = sshll.u32 %s584_s2, 4  ;;  %s386_s13 = int_to_ptr.vmem [resolvable:$true] %s385_s13 }
  0x32   :  { %445 = vmatpush3.bf16.msra.mxu1 %v480_v9  ;;  %233 = vmatpush1.bf16.msra.mxu0 %v481_v10  ;;  %v345_v29 = vsub.s32 2, %v336_v28  ;;  %v337_v31 = vsub.s32 0, %v336_v28  ;;  %v341_v32 = vsub.s32 1, %v336_v28  ;;  %s547_s14 = scalar_lea.vmem %s386_s13, 384  ;;  %p552_p3 = scmp.lt.s32.totalorder %s386_s13, %s386_s13 }
  0x33   :  { %446 = vmatprep.subr.bf16.mxu1 %v581_v0  ;;  %234 = vmatprep.subr.bf16.mxu0 %v482_v11  ;;  %p548_p2 = scmp.ne.s32.totalorder %s386_s13, %s547_s14  ;;  %p553_p4 = scmp.lt.s32.totalorder %s547_s14, %s547_s14 }
  0x34   :  { %v346_v33 = vrot.slane %v333_v30, %v345_v29  ;;  %v338_v34 = vrot.slane %v333_v30, %v337_v31  ;;  %v342_v35 = vrot.slane %v333_v30, %v341_v32 }
  0x35   :  { %p554_p5 = por %p553_p4, %p552_p3 }
  0x36   :  { %447 = vmatpush3.bf16.msra.mxu1 %v484_v12  ;;  %235 = vmatpush1.bf16.msra.mxu0 %v485_v13 }
  0x37   :  { %448 = vmatprep.subr.bf16.mxu1 %v581_v0  ;;  %236 = vmatprep.subr.bf16.mxu0 %v486_v14  ;;  %p555_p6 = pnand %p554_p5, %p548_p2 }
  0x3a   :  { %449 = vmatpush3.bf16.msra.mxu1 %v488_v15  ;;  %237 = vmatpush1.bf16.msra.mxu0 %v489_v16 }
  0x3b   :  { %450 = vmatprep.subr.bf16.mxu1 %v581_v0  ;;  %238 = vmatprep.subr.bf16.mxu0 %v490_v17 }
  0x3e   :  { %451 = vmatpush3.bf16.msra.mxu1 %v492_v18  ;;  %239 = vmatpush1.bf16.msra.mxu0 %v493_v19 }
  0x3f   :  { %452 = vmatprep.subr.bf16.mxu1 %v581_v0  ;;  %240 = vmatprep.subr.bf16.mxu0 %v494_v20 }
  0x42   :  { %453 = vmatpush3.bf16.msra.mxu1 %v496_v21  ;;  %241 = vmatpush1.bf16.msra.mxu0 %v497_v22 }
  0x43   :  { %454 = vmatprep.subr.bf16.mxu1 %v581_v0  ;;  %242 = vmatprep.subr.bf16.mxu0 %v498_v23 }
  0x46   :  { %455 = vmatpush3.bf16.msra.mxu1 %v500_v24  ;;  %243 = vmatpush1.bf16.msra.mxu0 %v501_v25 }
  0x49   :  { %457 = vmatmul.mubr.bf16.vlgmr.msra.gmra.mrb[0].mxu1 %v502_v26  ;;  %261 = vmatmul.mubr.bf16.vlgmr.msra.gmra.mrb[0].mxu0 %v502_v26 }
 0x11c   :  { %v305_v36 = vpop.f32.mrb[0].mxu1  ;;  %v262_v38 = vpop.f32.mrb[0].mxu0 }
 0x11d   :  { %v352_v37 = vadd.f32 %v346_v33, %v305_v36  ;;  %v458_v39 = vpop.f32.mrb[1].mxu1  ;;  %v350_v40 = vadd.f32 %v338_v34, %v262_v38  ;;  %v264_v41 = vpop.f32.mrb[1].mxu0 }
 0x11e   :  { %v308_v42 = vpop.f32.mrb[2].mxu1  ;;  %v351_v44 = vadd.f32 %v342_v35, %v264_v41  ;;  %v266_v46 = vpop.f32.mrb[2].mxu0 }
 0x11f   :  { %v428_v43 = vpack.c.bf16 %v352_v37, %v352_v37  ;;  %v355_v45 = vadd.f32 %v346_v33, %v308_v42  ;;  %v459_v47 = vpop.f32.mrb[3].mxu1  ;;  %v353_v48 = vadd.f32 %v338_v34, %v266_v46  ;;  %v268_v49 = vpop.f32.mrb[3].mxu0 }
 0x120   :  { %v427_v50 = vpack.c.bf16 %v351_v44, %v350_v40  ;;  %v354_v52 = vadd.f32 %v342_v35, %v268_v49 }
 0x121   :  { %377 = vst [vmem:[#allocation8 + $0x8] sm:$0xf] %v428_v43  ;;  %v430_v51 = vpack.c.bf16 %v355_v45, %v355_v45 }
 0x122   :  { %376 = vst [vmem:[#allocation8] sm:$0xff] %v427_v50  ;;  %v429_v53 = vpack.c.bf16 %v354_v52, %v353_v48 }
 0x123   :  { %379 = vst [vmem:[#allocation8 + $0x14] sm:$0xf] %v430_v51 }
 0x124   :  { %378 = vst [vmem:[#allocation8 + $0xc] sm:$0xff] %v429_v53 }
 0x125   :  { %558 = shalt.err (!%p555_p6)
}
 0x126   :  { %s559_s17 = scalar_lea.hbm %s653_s3, 384 }
 0x127   :  { %p560_p7 = scmp.ne.s32.totalorder %s653_s3, %s559_s17  ;;  %p563_p8 = scmp.lt.u32.totalorder %s559_s17, %s653_s3 }
 0x129   :  { %p565_p9 = pnand %p563_p8, %p560_p7 }
 0x12b   :  { %568 = shalt.err (!%p565_p9)
}
 0x12c   :  { %391 = dma.vmem_to_hbm [thread:$0]  %s386_s13, 384, %s653_s3, [#allocation5], %s579_s0, %s579_s0, %s580_s9  }
 0x12d   :  { %573 = dma.done.wait [#allocation5], 384  }
 0x12e   :  { %574 = vsyncadd [#allocation5], 4294966912 }
 0x12f   :  { %395 = vsyncpa [#allocation4], 1 }
 0x130   :  { %396 = vsyncpa [#allocation7], 1 }
 0x131   :  { %397 = vsyncpa [#allocation5], 1 }

</bundles_post_ra>
